<compile_context>
chip_gen: v7x
topology: tpu7x:2x2x1
jax: 0.10.0
libtpu: 0.0.40
codegen_flags: <defaults>
</compile_context>

<pallas_src>
import jax
import jax.numpy as jnp
from jax.experimental import pallas as pl
from jax.experimental.pallas import tpu as pltpu

HIDDEN_SIZE = 32
INPUT_SIZE = 1
OUTPUT_SIZE = 1


def rnn_kernel(x_ref, wih_ref, b_ref, whh_ref, wfc_ref, bfc_ref, out_ref):
    """Single-invocation kernel: full Elman-RNN unroll + final linear head.

    x_ref:   (T, B, 1)  time-major input, VMEM
    wih_ref: (1, H)     input->hidden weight (transposed; input_size == 1)
    b_ref:   (1, H)     b_ih + b_hh (pre-summed in wrapper)
    whh_ref: (H, H)     hidden->hidden weight (transposed)
    wfc_ref: (H, O)     fc weight (transposed)
    bfc_ref: (1, O)     fc bias
    out_ref: (B, O)     fc applied to the hidden state of the last time step
    """
    T = x_ref.shape[0]

    # Hoisted input projection for ALL time steps in one vectorized op:
    # (T, B, 1) * (1, H) + (1, H) -> (T, B, H).  Entirely off the serial
    # recurrence chain (VPU work that overlaps nothing critical).
    pre_x = x_ref[...] * wih_ref[...] + b_ref[...]

    whh = whh_ref[...]                       # (H, H), loaded from VMEM once

    # t == 0: h0 is zeros, so h1 = tanh(pre_x[0]) -- no matmul needed.
    h = jnp.tanh(pre_x[0])                   # (B, H), lives in vregs

    # Statically unrolled time loop (T small & static): the compiler sees the
    # whole dependence chain; h stays in registers between steps.
    for t in range(1, T):
        h = jnp.tanh(pre_x[t] +
                     jnp.dot(h, whh, preferred_element_type=jnp.float32))

    # fc on the last hidden state (== fc(out[:, -1, :]) of the PyTorch module).
    out = (jnp.dot(h, wfc_ref[...], preferred_element_type=jnp.float32)
           + bfc_ref[...])
    out_ref[...] = out.astype(out_ref.dtype)


def rnn_forward(x, params):
    """x: (B, T, I) float32, batch-first like the PyTorch module."""
    B, T, I = x.shape
    assert I == 1, "kernel specializes the input projection to input_size == 1"
    H = params["w_hh"].shape[0]
    O = params["w_fc"].shape[0]

    x_tm = jnp.transpose(x, (1, 0, 2)).astype(jnp.float32)        # (T, B, 1)
    wih_t = params["w_ih"].T.astype(jnp.float32)                  # (1, H)
    b = (params["b_ih"] + params["b_hh"]).reshape(1, H).astype(jnp.float32)
    whh_t = params["w_hh"].T.astype(jnp.float32)                  # (H, H)
    wfc_t = params["w_fc"].T.astype(jnp.float32)                  # (H, O)
    bfc = params["b_fc"].reshape(1, O).astype(jnp.float32)

    vmem = lambda: pl.BlockSpec(memory_space=pltpu.MemorySpace.VMEM)

    # Everything fits comfortably in VMEM at these sizes, so a single
    # ungridded invocation is used.  (For large B, add a grid over batch tiles
    # marked "parallel"; for very long T, stream the time axis in chunks.)
    return pl.pallas_call(
        rnn_kernel,
        out_shape=jax.ShapeDtypeStruct((B, O), jnp.float32),
        in_specs=[vmem() for _ in range(6)],
        out_specs=vmem(),
    )(x_tm, wih_t, b, whh_t, wfc_t, bfc)


def reference_forward(x, params):
    """Pure-JAX reference matching the PyTorch forward pass."""
    B, T, I = x.shape
    H = params["w_hh"].shape[0]
    h = jnp.zeros((B, H), jnp.float32)
    for t in range(T):
        h = jnp.tanh(x[:, t, :] @ params["w_ih"].T + params["b_ih"]
                     + h @ params["w_hh"].T + params["b_hh"])
    return h @ params["w_fc"].T + params["b_fc"]


def init_params(key, input_size, hidden_size, output_size):
    """Deterministic init mirroring PyTorch's U(-1/sqrt(H), 1/sqrt(H))."""
    ks = jax.random.split(key, 6)
    bound = 1.0 / jnp.sqrt(hidden_size)
    u = lambda k, shape, b: jax.random.uniform(k, shape, jnp.float32, -b, b)
    return {
        "w_ih": u(ks[0], (hidden_size, input_size), bound),
        "w_hh": u(ks[1], (hidden_size, hidden_size), bound),
        "b_ih": u(ks[2], (hidden_size,), bound),
        "b_hh": u(ks[3], (hidden_size,), bound),
        "w_fc": u(ks[4], (output_size, hidden_size), bound),
        "b_fc": u(ks[5], (output_size,), bound),
    }


if __name__ == "__main__":
    key = jax.random.PRNGKey(0)
    k_param, k_x = jax.random.split(key)

    B, T = 2, 8
    params = init_params(k_param, INPUT_SIZE, HIDDEN_SIZE, OUTPUT_SIZE)
    x = jax.random.normal(k_x, (B, T, INPUT_SIZE), jnp.float32)

    out = rnn_forward(x, params)
    out = jax.block_until_ready(out)

    ref = reference_forward(x, params)
    assert out.shape == (B, OUTPUT_SIZE), out.shape
    assert jnp.allclose(out, ref, atol=1e-5, rtol=1e-5), (out, ref)

    print("KERNEL_OK")
</pallas_src>

<mosaic_0001>
module attributes {stable_mosaic.version = 11 : i64} {
  func.func @rnn_kernel(%arg0: memref<8x2x1xf32, #tpu.memory_space<vmem>>, %arg1: memref<1x32xf32, #tpu.memory_space<vmem>>, %arg2: memref<1x32xf32, #tpu.memory_space<vmem>>, %arg3: memref<32x32xf32, #tpu.memory_space<vmem>>, %arg4: memref<32x1xf32, #tpu.memory_space<vmem>>, %arg5: memref<1x1xf32, #tpu.memory_space<vmem>>, %arg6: memref<2x1xf32, #tpu.memory_space<vmem>>) attributes {dimension_semantics = [], scalar_prefetch = 0 : i64, scratch_operands = 0 : i64, tpu.core_type = #tpu.core_type<tc>} {
    %c0 = arith.constant 0 : index
    %c0_0 = arith.constant 0 : index
    %c0_1 = arith.constant 0 : index
    %0 = vector.load %arg0[%c0, %c0_0, %c0_1] : memref<8x2x1xf32, #tpu.memory_space<vmem>>, vector<8x2x1xf32>
    %c0_2 = arith.constant 0 : index
    %c0_3 = arith.constant 0 : index
    %1 = vector.load %arg1[%c0_2, %c0_3] : memref<1x32xf32, #tpu.memory_space<vmem>>, vector<1x32xf32>
    %2 = vector.shape_cast %1 : vector<1x32xf32> to vector<1x1x32xf32>
    %3 = vector.broadcast %0 : vector<8x2x1xf32> to vector<8x2x32xf32>
    %4 = vector.broadcast %2 : vector<1x1x32xf32> to vector<8x2x32xf32>
    %5 = arith.mulf %3, %4 : vector<8x2x32xf32>
    %c0_4 = arith.constant 0 : index
    %c0_5 = arith.constant 0 : index
    %6 = vector.load %arg2[%c0_4, %c0_5] : memref<1x32xf32, #tpu.memory_space<vmem>>, vector<1x32xf32>
    %7 = vector.shape_cast %6 : vector<1x32xf32> to vector<1x1x32xf32>
    %8 = vector.broadcast %7 : vector<1x1x32xf32> to vector<8x2x32xf32>
    %9 = arith.addf %5, %8 : vector<8x2x32xf32>
    %c0_6 = arith.constant 0 : index
    %c0_7 = arith.constant 0 : index
    %10 = vector.load %arg3[%c0_6, %c0_7] : memref<32x32xf32, #tpu.memory_space<vmem>>, vector<32x32xf32>
    %11 = vector.extract_strided_slice %9 {offsets = [0, 0, 0], sizes = [1, 2, 32], strides = [1, 1, 1]} : vector<8x2x32xf32> to vector<1x2x32xf32>
    %12 = vector.shape_cast %11 : vector<1x2x32xf32> to vector<2x32xf32>
    %13 = math.tanh %12 : vector<2x32xf32>
    %14 = vector.extract_strided_slice %9 {offsets = [1, 0, 0], sizes = [1, 2, 32], strides = [1, 1, 1]} : vector<8x2x32xf32> to vector<1x2x32xf32>
    %15 = vector.shape_cast %14 : vector<1x2x32xf32> to vector<2x32xf32>
    %cst = arith.constant dense<0.000000e+00> : vector<2x32xf32>
    %16 = tpu.matmul %13, %10, %cst {dimension_numbers = #tpu.dot_dimension_numbers<[1], [0], [0], [1], [0, 0, 1, 1], [], []>} : vector<2x32xf32>, vector<32x32xf32>, vector<2x32xf32> -> vector<2x32xf32>
    %17 = arith.addf %15, %16 : vector<2x32xf32>
    %18 = math.tanh %17 : vector<2x32xf32>
    %19 = vector.extract_strided_slice %9 {offsets = [2, 0, 0], sizes = [1, 2, 32], strides = [1, 1, 1]} : vector<8x2x32xf32> to vector<1x2x32xf32>
    %20 = vector.shape_cast %19 : vector<1x2x32xf32> to vector<2x32xf32>
    %cst_8 = arith.constant dense<0.000000e+00> : vector<2x32xf32>
    %21 = tpu.matmul %18, %10, %cst_8 {dimension_numbers = #tpu.dot_dimension_numbers<[1], [0], [0], [1], [0, 0, 1, 1], [], []>} : vector<2x32xf32>, vector<32x32xf32>, vector<2x32xf32> -> vector<2x32xf32>
    %22 = arith.addf %20, %21 : vector<2x32xf32>
    %23 = math.tanh %22 : vector<2x32xf32>
    %24 = vector.extract_strided_slice %9 {offsets = [3, 0, 0], sizes = [1, 2, 32], strides = [1, 1, 1]} : vector<8x2x32xf32> to vector<1x2x32xf32>
    %25 = vector.shape_cast %24 : vector<1x2x32xf32> to vector<2x32xf32>
    %cst_9 = arith.constant dense<0.000000e+00> : vector<2x32xf32>
    %26 = tpu.matmul %23, %10, %cst_9 {dimension_numbers = #tpu.dot_dimension_numbers<[1], [0], [0], [1], [0, 0, 1, 1], [], []>} : vector<2x32xf32>, vector<32x32xf32>, vector<2x32xf32> -> vector<2x32xf32>
    %27 = arith.addf %25, %26 : vector<2x32xf32>
    %28 = math.tanh %27 : vector<2x32xf32>
    %29 = vector.extract_strided_slice %9 {offsets = [4, 0, 0], sizes = [1, 2, 32], strides = [1, 1, 1]} : vector<8x2x32xf32> to vector<1x2x32xf32>
    %30 = vector.shape_cast %29 : vector<1x2x32xf32> to vector<2x32xf32>
    %cst_10 = arith.constant dense<0.000000e+00> : vector<2x32xf32>
    %31 = tpu.matmul %28, %10, %cst_10 {dimension_numbers = #tpu.dot_dimension_numbers<[1], [0], [0], [1], [0, 0, 1, 1], [], []>} : vector<2x32xf32>, vector<32x32xf32>, vector<2x32xf32> -> vector<2x32xf32>
    %32 = arith.addf %30, %31 : vector<2x32xf32>
    %33 = math.tanh %32 : vector<2x32xf32>
    %34 = vector.extract_strided_slice %9 {offsets = [5, 0, 0], sizes = [1, 2, 32], strides = [1, 1, 1]} : vector<8x2x32xf32> to vector<1x2x32xf32>
    %35 = vector.shape_cast %34 : vector<1x2x32xf32> to vector<2x32xf32>
    %cst_11 = arith.constant dense<0.000000e+00> : vector<2x32xf32>
    %36 = tpu.matmul %33, %10, %cst_11 {dimension_numbers = #tpu.dot_dimension_numbers<[1], [0], [0], [1], [0, 0, 1, 1], [], []>} : vector<2x32xf32>, vector<32x32xf32>, vector<2x32xf32> -> vector<2x32xf32>
    %37 = arith.addf %35, %36 : vector<2x32xf32>
    %38 = math.tanh %37 : vector<2x32xf32>
    %39 = vector.extract_strided_slice %9 {offsets = [6, 0, 0], sizes = [1, 2, 32], strides = [1, 1, 1]} : vector<8x2x32xf32> to vector<1x2x32xf32>
    %40 = vector.shape_cast %39 : vector<1x2x32xf32> to vector<2x32xf32>
    %cst_12 = arith.constant dense<0.000000e+00> : vector<2x32xf32>
    %41 = tpu.matmul %38, %10, %cst_12 {dimension_numbers = #tpu.dot_dimension_numbers<[1], [0], [0], [1], [0, 0, 1, 1], [], []>} : vector<2x32xf32>, vector<32x32xf32>, vector<2x32xf32> -> vector<2x32xf32>
    %42 = arith.addf %40, %41 : vector<2x32xf32>
    %43 = math.tanh %42 : vector<2x32xf32>
    %44 = vector.extract_strided_slice %9 {offsets = [7, 0, 0], sizes = [1, 2, 32], strides = [1, 1, 1]} : vector<8x2x32xf32> to vector<1x2x32xf32>
    %45 = vector.shape_cast %44 : vector<1x2x32xf32> to vector<2x32xf32>
    %cst_13 = arith.constant dense<0.000000e+00> : vector<2x32xf32>
    %46 = tpu.matmul %43, %10, %cst_13 {dimension_numbers = #tpu.dot_dimension_numbers<[1], [0], [0], [1], [0, 0, 1, 1], [], []>} : vector<2x32xf32>, vector<32x32xf32>, vector<2x32xf32> -> vector<2x32xf32>
    %47 = arith.addf %45, %46 : vector<2x32xf32>
    %48 = math.tanh %47 : vector<2x32xf32>
    %c0_14 = arith.constant 0 : index
    %c0_15 = arith.constant 0 : index
    %49 = vector.load %arg4[%c0_14, %c0_15] : memref<32x1xf32, #tpu.memory_space<vmem>>, vector<32x1xf32>
    %cst_16 = arith.constant dense<0.000000e+00> : vector<2x1xf32>
    %50 = tpu.matmul %48, %49, %cst_16 {dimension_numbers = #tpu.dot_dimension_numbers<[1], [0], [0], [1], [0, 0, 1, 1], [], []>} : vector<2x32xf32>, vector<32x1xf32>, vector<2x1xf32> -> vector<2x1xf32>
    %c0_17 = arith.constant 0 : index
    %c0_18 = arith.constant 0 : index
    %51 = vector.load %arg5[%c0_17, %c0_18] : memref<1x1xf32, #tpu.memory_space<vmem>>, vector<1x1xf32>
    %52 = vector.broadcast %51 : vector<1x1xf32> to vector<2x1xf32>
    %53 = arith.addf %50, %52 : vector<2x1xf32>
    %c0_19 = arith.constant 0 : index
    %c0_20 = arith.constant 0 : index
    %54 = vector.load %arg6[%c0_19, %c0_20] : memref<2x1xf32, #tpu.memory_space<vmem>>, vector<2x1xf32>
    tpu.vector_store %arg6[%c0_19, %c0_20], %53 {strides = array<i32>} : memref<2x1xf32, #tpu.memory_space<vmem>>, vector<2x1xf32>,
    return
  }
}

</mosaic_0001>

<bundles_post_ra>
// kernel: tpu_custom_call.1
= control target key start
LH: loop header
LB: loop body
LE: loop exit
PB: predicated region body
PF: predicated region fallthrough
CT: control target
= control target key end

     0   :  { %v933_v0 = vmov 0   ;;  %v934_v4 = vmov 0.0|0.0   ;;  %vm935_vm0 = vmmov 0   ;;  %v936_v12 = vmov 0.0   ;;  %s1110_s0 = inlined_call_operand.vmem [shape: f32[8,2,1], index: 0, kind: input, shape index: {}]   ;;  %s1111_s3 = inlined_call_operand.vmem [shape: f32[32,32], index: 3, kind: input, shape index: {}]   ;;  %s1112_s1 = inlined_call_operand.vmem [shape: f32[1,32], index: 1, kind: input, shape index: {}]   ;;  %s1113_s2 = inlined_call_operand.vmem [shape: f32[1,32], index: 2, kind: input, shape index: {}]   ;;  %s1114_s4 = inlined_call_operand.vmem [shape: f32[32,1], index: 4, kind: input, shape index: {}]   ;;  %s1115_s5 = inlined_call_operand.<no memory space> [shape: f32[1,1], index: 5, kind: input, shape index: {}]   ;;  %s1116_s6 = inlined_call_operand.vmem [shape: f32[2,1], index: 6, kind: output, shape index: {}]  }
   0x1   :  { %915 = vset.pattern.permute.xlu0 %v933_v0  ;;  %v25_v1 = vld [vmem:[%s1110_s0] sm:$0x3]  ;;  %916 = vset.pattern.permute.xlu1 %v933_v0  ;;  %v26_v2 = vld [vmem:[%s1110_s0 + $0x2] sm:$0x3]  ;;  %v29_v3 = vld [vmem:[%s1110_s0 + $0x8] sm:$0x3] }
   0x2   :  { %36 = vperm.xlu0 %915, %v25_v1   ;;  %863 = vmatprep.subr.bf16.mxu0 %v934_v4  ;;  %v103_v5 = vld [vmem:[%s1111_s3] sm:$0xff]  ;;  %v104_v6 = vld [vmem:[%s1111_s3 + $0x8] sm:$0xff]  ;;  %v105_v9 = vld [vmem:[%s1111_s3 + $0x10] sm:$0xff]  ;;  %vm108_vm1 = vcmask 261120   ;;  %vm718_vm2 = vcmask 1024  }
   0x3   :  { %869 = vmatprep.subr.bf16.mxu1 %v934_v4  ;;  %v989_v7 = vpack.c.bf16 %v104_v6, %v103_v5  ;;  %v31_v8 = vld [vmem:[%s1110_s0 + $0xc] sm:$0x3]  ;;  %v106_v10 = vld [vmem:[%s1111_s3 + $0x18] sm:$0xff]  ;;  %783 = vmatprep.mubr.msk.f32.mxu0 %vm935_vm0, %v936_v12  ;;  %v1017_v13 = vld [vmem:[%s1112_s1] ss:$0 sm:$0xff] }
   0x4   :  { %v1003_v11 = vpack.c.bf16 %v106_v10, %v105_v9  ;;  %794 = vmatprep.mubr.msk.f32.mxu1 %vm935_vm0, %v936_v12  ;;  %v1022_v14 = vld [vmem:[%s1113_s2] ss:$0 sm:$0xff]  ;;  %v27_v19 = vld [vmem:[%s1110_s0 + $0x4] sm:$0x3]  ;;  %v28_v20 = vld [vmem:[%s1110_s0 + $0x6] sm:$0x3] }
   0x5   :  { %865 = vmatpush3.bf16.msra.mxu0 %v989_v7  ;;  %871 = vmatpush3.bf16.msra.mxu1 %v989_v7  ;;  %v30_v21 = vld [vmem:[%s1110_s0 + $0xa] sm:$0x3]  ;;  %v32_v22 = vld [vmem:[%s1110_s0 + $0xe] sm:$0x3]  ;;  %v634_v1 = vld [vmem:[%s1114_s4] sm:$0xff] }
   0x6   :  { %41 = vperm.xlu0 %915, %v26_v2   ;;  %866 = vmatprep.subr.bf16.mxu0 %v934_v4  ;;  %v635_v2 = vld [vmem:[%s1114_s4 + $0x8] sm:$0xff]  ;;  %v637_v6 = vld [vmem:[%s1114_s4 + $0x18] sm:$0xff] }
   0x7   :  { %872 = vmatprep.subr.bf16.mxu1 %v934_v4  ;;  %46 = vperm.xlu1 %916, %v27_v19   ;;  %v906_v5 = vpack.c.bf16 %v635_v2, %v634_v1 }
   0x9   :  { %868 = vmatpush3.bf16.msra.mxu0 %v1003_v11  ;;  %874 = vmatpush3.bf16.msra.mxu1 %v1003_v11 }
   0xa   :  { %56 = vperm.xlu0 %915, %v29_v3   ;;  %875 = vmatprep.subr.bf16.mxu0 %v934_v4  ;;  %v636_v3 = vld [vmem:[%s1114_s4 + $0x10] sm:$0xff] }
   0xb   :  { %881 = vmatprep.subr.bf16.mxu1 %v934_v4  ;;  %51 = vperm.xlu1 %916, %v28_v20  }
   0xe   :  { %66 = vperm.xlu0 %915, %v31_v8   ;;  %v11_v8 = vstv %s1115_s5 }
   0xf   :  { %61 = vperm.xlu1 %916, %v30_v21   ;;  %12 = vst [vmem:[#allocation2] sm:$0x1] %v11_v8 }
  0x13   :  { %71 = vperm.xlu1 %916, %v32_v22  }
  0x81   :  { %v37_v15 = vpop.permute.xlu0 %36 }
  0x82   :  { %v80_v16 = vmul.f32 %v1017_v13, %v37_v15 }
  0x84   :  { %v95_v17 = vadd.f32 %v1022_v14, %v80_v16 }
  0x85   :  { %v42_v23 = vpop.permute.xlu0 %41 }
  0x86   :  { %917 = vtanh.f32 %v95_v17  ;;  %v81_v24 = vmul.f32 %v1017_v13, %v42_v23  ;;  %v47_v30 = vpop.permute.xlu1 %46 }
  0x87   :  { %v82_v31 = vmul.f32 %v1017_v13, %v47_v30 }
  0x88   :  { %v96_v25 = vadd.f32 %v1022_v14, %v81_v24 }
  0x89   :  { %v97_v32 = vadd.f32 %v1022_v14, %v82_v31  ;;  %v57_v44 = vpop.permute.xlu0 %56 }
  0x8a   :  { %v52_v37 = vpop.permute.xlu1 %51  ;;  %v84_v45 = vmul.f32 %v1017_v13, %v57_v44 }
  0x8b   :  { %v83_v38 = vmul.f32 %v1017_v13, %v52_v37 }
  0x8c   :  { %v99_v46 = vadd.f32 %v1022_v14, %v84_v45 }
  0x8d   :  { %v98_v39 = vadd.f32 %v1022_v14, %v83_v38  ;;  %v67_v58 = vpop.permute.xlu0 %66 }
  0x8e   :  { %v62_v51 = vpop.permute.xlu1 %61  ;;  %v86_v59 = vmul.f32 %v1017_v13, %v67_v58 }
  0x8f   :  { %v85_v52 = vmul.f32 %v1017_v13, %v62_v51 }
  0x90   :  { %v918_v18 = vpop.eup %917  ;;  %v101_v60 = vadd.f32 %v1022_v14, %v86_v59 }
  0x91   :  { %784 = vmatmul.mubr.msk.f32.vlgmr.msra.gmra.mrb[0].mxu0 %vm108_vm1, %v918_v18  ;;  %v100_v53 = vadd.f32 %v1022_v14, %v85_v52  ;;  %v733_v18 = vld [vmem:[#allocation2] ss:$0 sm:$0xff] }
  0x92   :  { %877 = vmatpush3.bf16.msra.mxu0 %v989_v7  ;;  %805 = vmatprep.mubr.msk.f32.mxu0 %vm935_vm0, %v936_v12  ;;  %v72_v9 = vpop.permute.xlu1 %71 }
  0x93   :  { %878 = vmatprep.subr.bf16.mxu0 %v934_v4  ;;  %v87_v10 = vmul.f32 %v1017_v13, %v72_v9 }
  0x96   :  { %880 = vmatpush3.bf16.msra.mxu0 %v1003_v11 }
  0x97   :  { %887 = vmatprep.subr.bf16.mxu0 %v934_v4 }
 0x164   :  { %v178_v26 = vpop.f32.mrb[0].mxu0 }
 0x165   :  { %v182_v27 = vadd.f32 %v178_v26, %v96_v25  ;;  %v785_v28 = vpop.f32.mrb[1].mxu0 }
 0x167   :  { %919 = vtanh.f32 %v182_v27 }
 0x171   :  { %v920_v29 = vpop.eup %919 }
 0x172   :  { %795 = vmatmul.mubr.msk.f32.vlgmr.msra.gmra.mrb[0].mxu1 %vm108_vm1, %v920_v29 }
 0x173   :  { %883 = vmatpush3.bf16.msra.mxu1 %v989_v7  ;;  %816 = vmatprep.mubr.msk.f32.mxu1 %vm935_vm0, %v936_v12 }
 0x174   :  { %884 = vmatprep.subr.bf16.mxu1 %v934_v4 }
 0x177   :  { %886 = vmatpush3.bf16.msra.mxu1 %v1003_v11 }
 0x178   :  { %893 = vmatprep.subr.bf16.mxu1 %v934_v4 }
 0x245   :  { %v253_v33 = vpop.f32.mrb[0].mxu1 }
 0x246   :  { %v257_v34 = vadd.f32 %v253_v33, %v97_v32  ;;  %v796_v35 = vpop.f32.mrb[1].mxu1 }
 0x248   :  { %921 = vtanh.f32 %v257_v34 }
 0x252   :  { %v922_v36 = vpop.eup %921 }
 0x253   :  { %806 = vmatmul.mubr.msk.f32.vlgmr.msra.gmra.mrb[2].mxu0 %vm108_vm1, %v922_v36 }
 0x254   :  { %889 = vmatpush3.bf16.msra.mxu0 %v989_v7  ;;  %827 = vmatprep.mubr.msk.f32.mxu0 %vm935_vm0, %v936_v12 }
 0x255   :  { %890 = vmatprep.subr.bf16.mxu0 %v934_v4 }
 0x258   :  { %892 = vmatpush3.bf16.msra.mxu0 %v1003_v11 }
 0x259   :  { %899 = vmatprep.subr.bf16.mxu0 %v934_v4 }
 0x326   :  { %v328_v40 = vpop.f32.mrb[2].mxu0 }
 0x327   :  { %v332_v41 = vadd.f32 %v328_v40, %v98_v39  ;;  %v807_v42 = vpop.f32.mrb[3].mxu0 }
 0x329   :  { %923 = vtanh.f32 %v332_v41 }
 0x333   :  { %v924_v43 = vpop.eup %923 }
 0x334   :  { %817 = vmatmul.mubr.msk.f32.vlgmr.msra.gmra.mrb[2].mxu1 %vm108_vm1, %v924_v43 }
 0x335   :  { %895 = vmatpush3.bf16.msra.mxu1 %v989_v7  ;;  %838 = vmatprep.mubr.msk.f32.mxu1 %vm935_vm0, %v936_v12 }
 0x336   :  { %896 = vmatprep.subr.bf16.mxu1 %v934_v4 }
 0x339   :  { %898 = vmatpush3.bf16.msra.mxu1 %v1003_v11 }
 0x33a   :  { %905 = vmatprep.subr.bf16.mxu1 %v934_v4 }
 0x407   :  { %v403_v47 = vpop.f32.mrb[2].mxu1 }
 0x408   :  { %v407_v48 = vadd.f32 %v403_v47, %v99_v46  ;;  %v818_v49 = vpop.f32.mrb[3].mxu1 }
 0x40a   :  { %925 = vtanh.f32 %v407_v48 }
 0x414   :  { %v926_v50 = vpop.eup %925 }
 0x415   :  { %828 = vmatmul.mubr.msk.f32.vlgmr.msra.gmra.mrb[4].mxu0 %vm108_vm1, %v926_v50 }
 0x416   :  { %901 = vmatpush3.bf16.msra.mxu0 %v989_v7  ;;  %849 = vmatprep.mubr.msk.f32.mxu0 %vm935_vm0, %v936_v12  ;;  %v909_v7 = vpack.c.bf16 %v637_v6, %v636_v3 }
 0x417   :  { %902 = vmatprep.subr.bf16.mxu0 %v934_v4 }
 0x41a   :  { %904 = vmatpush3.bf16.msra.mxu0 %v1003_v11  ;;  %v102_v11 = vadd.f32 %v1022_v14, %v87_v10 }
 0x4e8   :  { %v478_v54 = vpop.f32.mrb[4].mxu0 }
 0x4e9   :  { %v482_v55 = vadd.f32 %v478_v54, %v100_v53  ;;  %v829_v56 = vpop.f32.mrb[5].mxu0 }
 0x4eb   :  { %927 = vtanh.f32 %v482_v55 }
 0x4f5   :  { %v928_v57 = vpop.eup %927 }
 0x4f6   :  { %839 = vmatmul.mubr.msk.f32.vlgmr.msra.gmra.mrb[4].mxu1 %vm108_vm1, %v928_v57 }
 0x4f7   :  { %860 = vmatprep.mubr.msk.f32.mxu1 %vm935_vm0, %v936_v12  ;;  %907 = vmatpush3.bf16.msra.mxu1 %v906_v5 }
 0x4f8   :  { %908 = vmatprep.subr.bf16.mxu1 %v934_v4 }
 0x4fb   :  { %910 = vmatpush3.bf16.msra.mxu1 %v909_v7 }
 0x5c9   :  { %v553_v61 = vpop.f32.mrb[4].mxu1 }
 0x5ca   :  { %v557_v62 = vadd.f32 %v553_v61, %v101_v60  ;;  %v840_v63 = vpop.f32.mrb[5].mxu1 }
 0x5cc   :  { %929 = vtanh.f32 %v557_v62 }
 0x5d6   :  { %v930_v0 = vpop.eup %929 }
 0x5d7   :  { %850 = vmatmul.mubr.msk.f32.vlgmr.msra.gmra.mrb[6].mxu0 %vm108_vm1, %v930_v0 }
 0x6aa   :  { %v628_v12 = vpop.f32.mrb[6].mxu0 }
 0x6ab   :  { %v632_v15 = vadd.f32 %v628_v12, %v102_v11  ;;  %v851_v16 = vpop.f32.mrb[7].mxu0 }
 0x6ad   :  { %931 = vtanh.f32 %v632_v15 }
 0x6b7   :  { %v932_v17 = vpop.eup %931 }
 0x6b8   :  { %861 = vmatmul.mubr.msk.f32.vlgmr.msra.gmra.mrb[6].mxu1 %vm108_vm1, %v932_v17 }
 0x78b   :  { %v714_v4 = vpop.f32.mrb[6].mxu1 }
 0x78c   :  { %v715_v19 = vadd.f32 %v733_v18, %v714_v4  ;;  %v862_v20 = vpop.f32.mrb[7].mxu1 }
 0x78e   :  { %719 = vst.msk [vmem:[%s1116_s6] sm:$0x3] %vm718_vm2, %v715_v19 }

</bundles_post_ra>
